<compile_context>
chip_gen: v7x
topology: tpu7x:2x2x1
jax: 0.10.0
libtpu: 0.0.40
codegen_flags: <defaults>
</compile_context>

<pallas_src>
import jax
import jax.numpy as jnp
from jax.experimental import pallas as pl
from jax.experimental.pallas import tpu as pltpu


def _pick_tile(total, base, cap):
    """Largest multiple of `base` that divides `total` and is <= cap (assumes base | total)."""
    best = base
    t = base
    while t <= min(total, cap):
        if total % t == 0:
            best = t
        t += base
    return best


def _pick_hidden_tile(hidden):
    # Prefer 256-aligned tiles (v6e/v7x MXU is 2x256x256), then 128-aligned; otherwise the
    # hidden dim is small/odd -> use the full dim (allowed since block dim == array dim).
    if hidden % 256 == 0:
        return _pick_tile(hidden, 256, 512)
    if hidden % 128 == 0:
        return _pick_tile(hidden, 128, 512)
    return hidden


def _pick_batch_tile(batch):
    # Largest of (8,4,2,1) dividing `batch` while leaving >= 2 grid steps on the batch axis
    # (keeps both v7x TensorCores busy even when the hidden axis does not split).
    for t in (8, 4, 2, 1):
        if batch % t == 0 and (batch // t >= 2 or t == 1):
            return t
    return 1


def embeddings_kernel(patches_ref, w_ref, cls_ref, add_ref, out_ref):
    # patches_ref: (TB, num_patches, patch_dim)   bf16
    # w_ref:       (patch_dim, HN)                bf16
    # cls_ref:     (1, HN)                        f32   = cls_token + pos_emb[0]
    # add_ref:     (num_patches, HN)              f32   = conv_bias + pos_emb[1:]
    # out_ref:     (TB, num_patches + 1, HN)      out dtype (bf16 by default)
    tb, num_patches, _ = patches_ref.shape
    w = w_ref[...]
    add = add_ref[...]
    cls_row = cls_ref[...].astype(out_ref.dtype)            # (1, HN)
    # Static unroll over the (small, <=8) per-step batch; each iteration's f32 temporary is
    # only (num_patches, HN) and is consumed immediately by its store.
    for i in range(tb):
        out_ref[i, pl.ds(0, 1), :] = cls_row
        proj = jnp.dot(patches_ref[i], w, preferred_element_type=jnp.float32)
        out_ref[i, pl.ds(1, num_patches), :] = (proj + add).astype(out_ref.dtype)


def vit_embeddings(x_nchw, conv_w, conv_b, cls_token, pos_emb, patch_size,
                   *, out_dtype=jnp.bfloat16):
    """x_nchw: [B, C, H, W] float32. Returns [B, num_patches + 1, hidden] in `out_dtype`."""
    B, C, H, W = x_nchw.shape
    P = patch_size
    hp, wp = H // P, W // P
    num_patches = hp * wp
    patch_dim = C * P * P
    hidden = conv_w.shape[0]
    seq = num_patches + 1

    # --- glue: single fused cast+transpose HBM copy (reshapes are free) ---
    # TODO(synk): folding patch extraction fully into the kernel (NHWC strip DMA + in-VMEM
    # rearrange) would remove this one remaining HBM copy as well.
    patches = (x_nchw.reshape(B, C, hp, P, wp, P)
               .transpose(0, 2, 4, 1, 3, 5)
               .astype(jnp.bfloat16)
               .reshape(B, num_patches, patch_dim))

    # Conv2d weight [hidden, C, P, P] -> matmul weight [patch_dim, hidden] (tiny), bf16.
    w = conv_w.reshape(hidden, patch_dim).T.astype(jnp.bfloat16)

    # Fold conv bias, CLS token and positional embeddings into two small f32 addends.
    pos = pos_emb.reshape(seq, hidden).astype(jnp.float32)
    add_cls = cls_token.reshape(1, hidden).astype(jnp.float32) + pos[0:1]   # (1, hidden)
    add_body = conv_b.reshape(1, hidden).astype(jnp.float32) + pos[1:]      # (np, hidden)

    TB = _pick_batch_tile(B)
    HN = _pick_hidden_tile(hidden)
    n_blocks = hidden // HN

    flops = 2 * B * num_patches * patch_dim * hidden
    bytes_accessed = (B * num_patches * patch_dim * 2            # bf16 patches
                      + patch_dim * hidden * 2                   # bf16 weight
                      + (num_patches + 1) * hidden * 4           # f32 addends
                      + B * seq * hidden * jnp.dtype(out_dtype).itemsize)

    out = pl.pallas_call(
        embeddings_kernel,
        out_shape=jax.ShapeDtypeStruct((B, seq, hidden), out_dtype),
        grid_spec=pltpu.PrefetchScalarGridSpec(
            num_scalar_prefetch=0,
            # hidden axis innermost; patches block index is invariant in `n`, so the big LHS
            # block is DMA'd once per batch tile and reused across the hidden sweep.
            grid=(B // TB, n_blocks),
            in_specs=[
                pl.BlockSpec((TB, num_patches, patch_dim), lambda b, n: (b, 0, 0)),
                pl.BlockSpec((patch_dim, HN), lambda b, n: (0, n)),
                pl.BlockSpec((1, HN), lambda b, n: (0, n)),
                pl.BlockSpec((num_patches, HN), lambda b, n: (0, n)),
            ],
            out_specs=pl.BlockSpec((TB, seq, HN), lambda b, n: (b, 0, n)),
        ),
        compiler_params=pltpu.CompilerParams(
            dimension_semantics=("parallel", "arbitrary"),
            vmem_limit_bytes=32 * 1024 * 1024),
        cost_estimate=pl.CostEstimate(flops=flops, transcendentals=0,
                                      bytes_accessed=bytes_accessed),
    )(patches, w, add_cls, add_body)

    return out


if __name__ == "__main__":
    # Small config consistent with the module
    config = dict(image_size=16, patch_size=4, num_channels=4,
                  hidden_size=32, hidden_dropout_prob=0.0)
    B = 2
    C = config["num_channels"]
    H = W = config["image_size"]
    P = config["patch_size"]
    hidden = config["hidden_size"]
    num_patches = (H // P) ** 2

    key = jax.random.PRNGKey(0)
    k_x, k_w, k_b, k_cls, k_pos = jax.random.split(key, 5)

    x = jax.random.normal(k_x, (B, C, H, W), dtype=jnp.float32)
    conv_w = jax.random.normal(k_w, (hidden, C, P, P), dtype=jnp.float32) * 0.02
    conv_b = jax.random.normal(k_b, (hidden,), dtype=jnp.float32) * 0.02
    cls_token = jax.random.normal(k_cls, (1, 1, hidden), dtype=jnp.float32)
    pos_emb = jax.random.normal(k_pos, (1, num_patches + 1, hidden), dtype=jnp.float32)

    fn = jax.jit(lambda xx, ww, bb, cc, pp: vit_embeddings(xx, ww, bb, cc, pp, P))
    out = jax.block_until_ready(fn(x, conv_w, conv_b, cls_token, pos_emb))

    # Reference in plain JAX (f32 math). Kernel uses bf16 matmul operands with f32
    # accumulation and a bf16 output, so allow bf16-level rounding.
    patches_ref = x.reshape(B, C, H // P, P, W // P, P).transpose(0, 2, 4, 1, 3, 5)
    patches_ref = patches_ref.reshape(B, num_patches, C * P * P)
    proj_ref = patches_ref @ conv_w.reshape(hidden, -1).T + conv_b
    cls_ref = jnp.broadcast_to(cls_token, (B, 1, hidden))
    ref = jnp.concatenate([cls_ref, proj_ref], axis=1) + pos_emb

    out_f32 = out.astype(jnp.float32)
    assert out.shape == (B, num_patches + 1, hidden)
    assert jnp.allclose(out_f32, ref, atol=3e-2, rtol=3e-2), float(jnp.max(jnp.abs(out_f32 - ref)))

    # TODO(synk): dropout is identity (eval mode); training-mode RNG dropout not implemented.
    print("KERNEL_OK")
</pallas_src>

<mosaic_0001>
module attributes {stable_mosaic.version = 11 : i64} {
  func.func @embeddings_kernel(%arg0: i32, %arg1: i32, %arg2: memref<1x16x64xbf16, #tpu.memory_space<vmem>>, %arg3: memref<64x32xbf16, #tpu.memory_space<vmem>>, %arg4: memref<1x32xf32, #tpu.memory_space<vmem>>, %arg5: memref<16x32xf32, #tpu.memory_space<vmem>>, %arg6: memref<1x17x32xbf16, #tpu.memory_space<vmem>>) attributes {dimension_semantics = [#tpu.dimension_semantics<parallel>, #tpu.dimension_semantics<arbitrary>], iteration_bounds = array<i64: 2, 1>, scalar_prefetch = 0 : i64, scratch_operands = 0 : i64, tpu.core_type = #tpu.core_type<tc>, window_params = [{transform_indices = @transform_0, window_bounds = array<i64: 1, 16, 64>}, {transform_indices = @transform_1, window_bounds = array<i64: 64, 32>}, {transform_indices = @transform_2, window_bounds = array<i64: 1, 32>}, {transform_indices = @transform_3, window_bounds = array<i64: 16, 32>}, {transform_indices = @transform_4, window_bounds = array<i64: 1, 17, 32>}]} {
    %c0 = arith.constant 0 : index
    %c0_0 = arith.constant 0 : index
    %0 = vector.load %arg3[%c0, %c0_0] : memref<64x32xbf16, #tpu.memory_space<vmem>>, vector<64x32xbf16>
    %c0_1 = arith.constant 0 : index
    %c0_2 = arith.constant 0 : index
    %1 = vector.load %arg5[%c0_1, %c0_2] : memref<16x32xf32, #tpu.memory_space<vmem>>, vector<16x32xf32>
    %c0_3 = arith.constant 0 : index
    %c0_4 = arith.constant 0 : index
    %2 = vector.load %arg4[%c0_3, %c0_4] : memref<1x32xf32, #tpu.memory_space<vmem>>, vector<1x32xf32>
    %3 = arith.truncf %2 : vector<1x32xf32> to vector<1x32xbf16>
    %c0_5 = arith.constant 0 : index
    %c0_6 = arith.constant 0 : index
    %c0_7 = arith.constant 0 : index
    %4 = vector.load %arg6[%c0_5, %c0_6, %c0_7] : memref<1x17x32xbf16, #tpu.memory_space<vmem>>, vector<1x1x32xbf16>
    %5 = vector.shape_cast %4 : vector<1x1x32xbf16> to vector<1x32xbf16>
    %6 = vector.shape_cast %3 : vector<1x32xbf16> to vector<1x1x32xbf16>
    tpu.vector_store %arg6[%c0_5, %c0_6, %c0_7], %6 {strides = array<i32>} : memref<1x17x32xbf16, #tpu.memory_space<vmem>>, vector<1x1x32xbf16>,
    %c0_8 = arith.constant 0 : index
    %c0_9 = arith.constant 0 : index
    %c0_10 = arith.constant 0 : index
    %7 = vector.load %arg2[%c0_8, %c0_9, %c0_10] : memref<1x16x64xbf16, #tpu.memory_space<vmem>>, vector<1x16x64xbf16>
    %8 = vector.shape_cast %7 : vector<1x16x64xbf16> to vector<16x64xbf16>
    %cst = arith.constant dense<0.000000e+00> : vector<16x32xf32>
    %9 = tpu.matmul %8, %0, %cst {dimension_numbers = #tpu.dot_dimension_numbers<[1], [0], [0], [1], [0, 0, 1, 1], [], []>} : vector<16x64xbf16>, vector<64x32xbf16>, vector<16x32xf32> -> vector<16x32xf32>
    %10 = arith.addf %9, %1 : vector<16x32xf32>
    %11 = arith.truncf %10 : vector<16x32xf32> to vector<16x32xbf16>
    %c0_11 = arith.constant 0 : index
    %c1 = arith.constant 1 : index
    %c0_12 = arith.constant 0 : index
    %12 = vector.load %arg6[%c0_11, %c1, %c0_12] : memref<1x17x32xbf16, #tpu.memory_space<vmem>>, vector<1x16x32xbf16>
    %13 = vector.shape_cast %12 : vector<1x16x32xbf16> to vector<16x32xbf16>
    %14 = vector.shape_cast %11 : vector<16x32xbf16> to vector<1x16x32xbf16>
    tpu.vector_store %arg6[%c0_11, %c1, %c0_12], %14 {strides = array<i32>} : memref<1x17x32xbf16, #tpu.memory_space<vmem>>, vector<1x16x32xbf16>,
    return
  }
  func.func @transform_0(%arg0: i32, %arg1: i32) -> (i32, i32, i32) {
    %c0_i32 = arith.constant 0 : i32
    %c0_i32_0 = arith.constant 0 : i32
    %c0_i32_1 = arith.constant 0 : i32
    return %arg0, %c0_i32, %c0_i32_0 : i32, i32, i32
  }
  func.func @transform_1(%arg0: i32, %arg1: i32) -> (i32, i32) {
    %c0_i32 = arith.constant 0 : i32
    %c0_i32_0 = arith.constant 0 : i32
    return %c0_i32, %arg1 : i32, i32
  }
  func.func @transform_2(%arg0: i32, %arg1: i32) -> (i32, i32) {
    %c0_i32 = arith.constant 0 : i32
    %c0_i32_0 = arith.constant 0 : i32
    return %c0_i32, %arg1 : i32, i32
  }
  func.func @transform_3(%arg0: i32, %arg1: i32) -> (i32, i32) {
    %c0_i32 = arith.constant 0 : i32
    %c0_i32_0 = arith.constant 0 : i32
    return %c0_i32, %arg1 : i32, i32
  }
  func.func @transform_4(%arg0: i32, %arg1: i32) -> (i32, i32, i32) {
    %c0_i32 = arith.constant 0 : i32
    %c0_i32_0 = arith.constant 0 : i32
    return %arg0, %c0_i32, %arg1 : i32, i32, i32
  }
}

</mosaic_0001>

<bundles_post_ra>
// kernel: _lambda_.1
= control target key start
LH: loop header
LB: loop body
LE: loop exit
PB: predicated region body
PF: predicated region fallthrough
CT: control target
= control target key end

     0   :  { %s644_s15 = smov 0   ;;  %s646_s16 = smov 0   ;;  %s719_s0 = inlined_call_operand.vmem [shape: bf16[2,16,64], index: 0, kind: input, shape index: {}]   ;;  %s720_s1 = inlined_call_operand.vmem [shape: bf16[64,32], index: 1, kind: input, shape index: {}]   ;;  %s721_s2 = inlined_call_operand.vmem [shape: f32[1,32], index: 2, kind: input, shape index: {}]   ;;  %s722_s3 = inlined_call_operand.vmem [shape: f32[16,32], index: 3, kind: input, shape index: {}]   ;;  %s723_s4 = inlined_call_operand.vmem [shape: bf16[2,17,32], index: 4, kind: output, shape index: {}]  }
   0x1   :  { %s648_s17 = smov 0  }
   0x2 LB: > { %s26_s18 = sadd.s32 1, %s611_s16  ;;  %p527_p0 = scmp.ge.s32.totalorder %s615_s17, 1  ;;  %s615_s17 = sphi %s648_s17, %s14_s17   ;;  %s611_s16 = sphi %s646_s16, %s727_s16   ;;  %s607_s15 = sphi %s644_s15, %s726_s15  }
   0x3   : > { %p28_p1 = scmp.ge.s32.totalorder %s26_s18, 2  ;;  %p202_p2 = scmp.lt.s32.totalorder %s615_s17, 3 }
   0x5   : > { %s729_s18 = smov (%p28_p1, %s26_s18), 0  ;;  %p203_p3 = pnand %p527_p0, %p202_p2 }
   0x6   : > { %v588_v0 = vld [vmem:[%s720_s1] sm:$0xff] (!%p203_p3)   ;;  %v617_v1 = vmov (!%p203_p3), 0.0   ;;  %v589_v2 = vld [vmem:[%s720_s1 + $0x8] sm:$0xff] (!%p203_p3)   ;;  %vm618_vm0 = vmmov (!%p203_p3), 0   ;;  %p242_p4 = scmp.lt.s32.totalorder (!%p203_p3), %s607_s15, 1  ;;  %vm279_vm1 = vcmask (!%p203_p3), 253952  }
   0x7   : > { %206 = sbr.rel (%p203_p3) target bundleno = 249 (0xf9), region = 36  ;;  %549 = vmatprep.subr.bf16.mxu0 (!%p203_p3), %v617_v1  ;;  %557 = vmatprep.mubr.msk.bf16.mxu0 (!%p203_p3), %vm618_vm0, %v617_v1  ;;  %v277_v3 = vld [vmem:[%s721_s2] sm:$0x1] (!%p203_p3)  ;;  %vm280_vm2 = vsmask.f32 (!%p203_p3), 256  ;;  %v590_v4 = vld [vmem:[%s720_s1 + $0x10] sm:$0xff] (!%p203_p3)  }
   0x8   : > { %550 = vmatpush3.bf16.msra.mxu0 (!%p203_p3), %v588_v0  ;;  %v278_v5 = vpack.c.bf16 (!%p203_p3), %v277_v3, %v277_v3  ;;  %vm678_vm3 = vmand (!%p203_p3), %vm279_vm1, %vm280_vm2  ;;  %v591_v8 = vld [vmem:[%s720_s1 + $0x18] sm:$0xff] (!%p203_p3)   ;;  %vm316_vm4 = vcmask (!%p203_p3), 523264   ;;  %v275_v11 = vld [vmem:[%s722_s3] sm:$0xff] (!%p203_p3)  ;;  %vm389_vm5 = vcmask (!%p203_p3), 257024   ;;  %vm390_vm6 = vsmask.f32 (!%p203_p3), 7938 }
   0x9   : > { %551 = vmatprep.subr.bf16.mxu0 (!%p203_p3), %v617_v1  ;;  %v276_v13 = vld [vmem:[%s722_s3 + $0x8] sm:$0xff] (!%p203_p3)  ;;  %vm367_vm7 = vsmask.f32 (!%p203_p3), 4368  ;;  %vm391_vm8 = vmand (!%p203_p3), %vm389_vm5, %vm390_vm6 }
   0xa   : > { %vm368_vm9 = vmor (!%p203_p3), %vm280_vm2, %vm367_vm7 }
   0xc   : > { %552 = vmatpush3.bf16.msra.mxu0 (!%p203_p3), %v589_v2 }
   0xd   : > { %553 = vmatprep.subr.bf16.mxu0 (!%p203_p3), %v617_v1 }
   0xe   : > { %s731_s15 = smov (!%p242_p4, %s607_s15), 1 }
   0xf   : > { %s541_s27 = sshll.u32 %s731_s15, 3  ;;  %s561_s28 = smul.u32 12, %s731_s15 }
  0x10   : > { %s246_s5 = scalar_lea.vmem %s719_s0, %s541_s27  ;;  %554 = vmatpush3.bf16.msra.mxu0 %v590_v4 }
  0x11   : > { %s685_s8 = scalar_lea.vmem %s723_s4, %s561_s28  ;;  %555 = vmatprep.subr.bf16.mxu0 %v617_v1  ;;  %v592_v10 = vld [vmem:[%s246_s5] sm:$0xff]  }
  0x12   : > { %v282_v7 = vld [vmem:[%s685_s8] sm:$0x1]  ;;  %v397_v29 = vld [vmem:[%s685_s8 + $0x8] sm:$0x1] }
  0x13   : > { %v283_v9 = vsel %vm678_vm3, %v278_v5, %v282_v7 }
  0x14   : > { %284 = vst [vmem:[%s685_s8] sm:$0x1] %v283_v9  ;;  %556 = vmatpush3.bf16.msra.mxu0 %v591_v8 }
  0x17   : > { %558 = vmatmul.mubr.msk.bf16.vlgmr.msra.gmra.mrb[0].mxu0 %vm316_vm4, %v592_v10 }
  0x1b   : > { %v392_v25 = vld [vmem:[%s685_s8] sm:$0xf] }
  0xea   : > { %v354_v12 = vpop.f32.mrb[0].mxu0 }
  0xeb   : > { %v355_v14 = vadd.f32 %v354_v12, %v275_v11  ;;  %v559_v15 = vpop.f32.mrb[1].mxu0 }
  0xec   : > { %v357_v16 = vpop.f32.mrb[2].mxu0 }
  0xed   : > { %v542_v17 = vpack.c.bf16 %v355_v14, %v355_v14  ;;  %v358_v18 = vadd.f32 %v357_v16, %v276_v13  ;;  %v560_v19 = vpop.f32.mrb[3].mxu0 }
  0xef   : > { %v370_v20 = vshrl.u32 %v542_v17, 16  ;;  %v543_v21 = vpack.c.bf16 %v358_v18, %v358_v18  ;;  %v373_v23 = vshll.u32 %v542_v17, 16 }
  0xf1   : > { %v372_v22 = vrot.slane %v370_v20, 7  ;;  %v378_v24 = vshrl.u32 %v543_v21, 16  ;;  %v381_v28 = vshll.u32 %v543_v21, 16 }
  0xf3   : > { %v375_v26 = vor.u32 %v373_v23, %v372_v22  ;;  %v380_v27 = vrot.slane %v378_v24, 7  ;;  %v376_v30 = vrot.slane %v372_v22, 4 }
  0xf5   : > { %v393_v31 = vsel %vm391_vm8, %v375_v26, %v392_v25  ;;  %v383_v32 = vor.u32 %v381_v28, %v380_v27  ;;  %v385_v33 = vrot.slane %v380_v27, 4 }
  0xf6   : > { %394 = vst [vmem:[%s685_s8] sm:$0xf] %v393_v31 }
  0xf7   : > { %v384_v34 = vsel %vm368_vm9, %v376_v30, %v383_v32  ;;  %v398_v35 = vsel %vm678_vm3, %v385_v33, %v397_v29 }
  0xf8   : > { %396 = vst.msk [vmem:[%s685_s8 + $0x4] sm:$0xf] %vm389_vm5, %v384_v34  ;;  %399 = vst [vmem:[%s685_s8 + $0x8] sm:$0x1] %v398_v35 }
  0xf9 PF: > { %s14_s17 = sadd.s32 1, %s615_s17   ;;  %s726_s15 = smov %s611_s16 }
  0xfa   : > { %p11_p5 = scmp.ge.s32.totalorder %s14_s17, 4   ;;  %s727_s16 = smov %s729_s18 }
  0xfc   :  { %13 = sbr.rel (!%p11_p5) target bundleno = 2 (0x2), region = 75 }

</bundles_post_ra>
